<compile_context>
chip_gen: v7x
topology: tpu7x:2x2x1
jax: 0.10.0
libtpu: 0.0.40
codegen_flags: <defaults>
</compile_context>

<pallas_src>
import functools

import jax
import jax.numpy as jnp
from jax.experimental import pallas as pl
from jax.experimental.pallas import tpu as pltpu


def _lsr_kernel(x_ref, t_ref, out_ref, *, e: float, C: int, B: int, bt: int,
                emit_sum: bool, use_mxu: bool):
    xb = x_ref[...]                                   # (bt, C) native dtype
    t = t_ref[...]                                    # (bt, 1) int32

    # Numerically stable log-softmax pieces.  Row max is taken on the native
    # dtype tile; the f32 cast fuses into the subtract (no extra f32 copy).
    m = jnp.max(xb, axis=1, keepdims=True).astype(jnp.float32)       # (bt, 1)
    z = xb.astype(jnp.float32) - m                                    # (bt, C)

    # z at the target class: broadcast compare against a (1, C) lane iota
    # (no (bt, C) int32 tensor materialized).
    col = jax.lax.broadcasted_iota(jnp.int32, (1, C), 1)
    z_t = jnp.sum(jnp.where(col == t, z, 0.0), axis=1, keepdims=True)  # (bt,1)

    ez = jnp.exp(z)                                                   # (bt, C)
    if use_mxu:
        # Offload the two pure lane reductions to the otherwise-idle MXU.
        ones = jnp.ones((C, 128), jnp.float32)
        dn = (((1,), (0,)), ((), ()))
        sum_exp = jax.lax.dot_general(
            ez, ones, dn, precision=jax.lax.Precision.HIGHEST,
            preferred_element_type=jnp.float32)[:, :1]                # (bt, 1)
        sum_z = jax.lax.dot_general(
            z, ones, dn, precision=jax.lax.Precision.HIGHEST,
            preferred_element_type=jnp.float32)[:, :1]                # (bt, 1)
    else:
        sum_exp = jnp.sum(ez, axis=1, keepdims=True)                  # (bt, 1)
        sum_z = jnp.sum(z, axis=1, keepdims=True)                     # (bt, 1)

    lse = jnp.log(sum_exp)                                            # (bt, 1)

    # loss_i = lse_i - (1-e) * z_{i, t_i} - (e/C) * sum_c z_{i,c}
    loss = lse - (1.0 - e) * z_t - (e / C) * sum_z                    # (bt, 1)

    # Mask rows beyond the logical batch: the final partial tile reads
    # garbage rows, which must not poison the partial sum (and keeps NaN/inf
    # out of the per-row output for NaN-checking tools).
    row = jax.lax.broadcasted_iota(jnp.int32, (bt, 1), 0)
    valid = row + pl.program_id(0) * bt < B
    loss = jnp.where(valid, loss, 0.0)

    if emit_sum:
        # One partial sum per tile: tiny output DMA, no masked per-row stores.
        out_ref[...] = jnp.sum(loss, axis=0, keepdims=True).reshape(1, 1, 1)
    else:
        out_ref[...] = loss


def _pick_block_rows(B: int, C: int, itemsize: int) -> int:
    """Row tile sized against the real VMEM footprint (fits v7x 64 MiB)."""
    sub = max(8, 32 // itemsize)            # dtype-native sublane multiple
    # 2x double-buffered native-dtype input rows + ~3 full-width f32
    # intermediates (z, exp(z), masked z) + small per-row vectors.
    bytes_per_row = 2 * C * itemsize + 3 * C * 4 + 64
    budget = 40 << 20                       # headroom under the 48 MiB limit
    bt = max(sub, budget // bytes_per_row)
    if bt >= 128:
        bt = (bt // 128) * 128              # lane/sublane friendly large tiles
    else:
        bt = (bt // sub) * sub
    bt = min(bt, 1024)
    b_ceil = -(-B // sub) * sub
    return max(sub, min(bt, b_ceil))


def lsr_loss(x: jax.Array, target: jax.Array, e: float = 0.1,
             reduction: str = "mean", block_rows: int | None = None) -> jax.Array:
    """Label-smoothed cross entropy (matches the PyTorch LSR module)."""
    if x.ndim != 2:
        raise ValueError(f"Only 2 dimension tensors are implemented, got {x.shape}")
    if x.shape[0] != target.shape[0]:
        raise ValueError("Expected input batchsize to match target batch_size")
    if reduction not in ("none", "sum", "mean"):
        raise ValueError("expect reduction to be one of none, mean, sum")

    B, C = x.shape
    itemsize = jnp.dtype(x.dtype).itemsize
    bt = int(block_rows) if block_rows is not None else _pick_block_rows(B, C, itemsize)
    assert bt > 0 and bt % 8 == 0, "block_rows must be a positive multiple of 8"

    G = pl.cdiv(B, bt)                       # no jnp.pad: partial final block
    t2d = target.astype(jnp.int32).reshape(B, 1)

    emit_sum = reduction != "none"
    use_mxu = (C % 128 == 0) and (C <= 8192)

    kernel = functools.partial(_lsr_kernel, e=float(e), C=C, B=B, bt=bt,
                               emit_sum=emit_sum, use_mxu=use_mxu)

    if emit_sum:
        out_shape = jax.ShapeDtypeStruct((G, 1, 1), jnp.float32)
        out_spec = pl.BlockSpec((1, 1, 1), lambda i: (i, 0, 0))
        out_bytes = G * 4
    else:
        out_shape = jax.ShapeDtypeStruct((B, 1), jnp.float32)
        out_spec = pl.BlockSpec((bt, 1), lambda i: (i, 0))
        out_bytes = B * 4

    cost = pl.CostEstimate(
        flops=6 * B * C,
        transcendentals=B * C,
        bytes_accessed=B * C * itemsize + B * 4 + out_bytes,
    )

    out = pl.pallas_call(
        kernel,
        out_shape=out_shape,
        grid_spec=pltpu.PrefetchScalarGridSpec(
            num_scalar_prefetch=0,
            grid=(G,),
            in_specs=[
                pl.BlockSpec((bt, C), lambda i: (i, 0)),   # logits tile
                pl.BlockSpec((bt, 1), lambda i: (i, 0)),   # targets tile
            ],
            out_specs=out_spec,
        ),
        compiler_params=pltpu.CompilerParams(
            dimension_semantics=("parallel",),             # independent tiles
            vmem_limit_bytes=48 * 1024 * 1024,             # safe on v5e/v6e/v7x
        ),
        cost_estimate=cost,
    )(x, t2d)

    if reduction == "none":
        return out[:, 0]
    total = jnp.sum(out)
    if reduction == "sum":
        return total
    return total / B


def _lsr_ref(x, target, e=0.1, reduction="mean"):
    xf = x.astype(jnp.float32)
    C = x.shape[1]
    logp = jax.nn.log_softmax(xf, axis=1)
    one_hot = jax.nn.one_hot(target, C, dtype=jnp.float32)
    smoothed = one_hot * (1.0 - e) + e / C
    loss = jnp.sum(-logp * smoothed, axis=1)
    if reduction == "none":
        return loss
    if reduction == "sum":
        return jnp.sum(loss)
    return jnp.mean(loss)


if __name__ == "__main__":
    key = jax.random.PRNGKey(0)
    k1x, k1t, k2x, k2t, k3x, k3t = jax.random.split(key, 6)

    # Case 1: tiny batch (B < 8 => single partial tile), mean reduction.
    B1, C1 = 2, 32
    x1 = jax.random.normal(k1x, (B1, C1), dtype=jnp.float32)
    t1 = jax.random.randint(k1t, (B1,), 0, C1, dtype=jnp.int32)
    out1 = jax.block_until_ready(lsr_loss(x1, t1, e=0.1))
    ref1 = _lsr_ref(x1, t1, e=0.1)
    assert jnp.allclose(out1, ref1, atol=1e-5, rtol=1e-5), (out1, ref1)

    # Case 2: B not a multiple of the tile, multi-tile grid (no padding).
    B2, C2 = 13, 32
    x2 = jax.random.normal(k2x, (B2, C2), dtype=jnp.float32)
    t2 = jax.random.randint(k2t, (B2,), 0, C2, dtype=jnp.int32)
    out2 = jax.block_until_ready(lsr_loss(x2, t2, e=0.1, block_rows=8))
    ref2 = _lsr_ref(x2, t2, e=0.1)
    assert jnp.allclose(out2, ref2, atol=1e-5, rtol=1e-5), (out2, ref2)

    # Case 2b: reduction='none' per-row output path.
    out2n = jax.block_until_ready(
        lsr_loss(x2, t2, e=0.1, reduction="none", block_rows=8))
    ref2n = _lsr_ref(x2, t2, e=0.1, reduction="none")
    assert jnp.allclose(out2n, ref2n, atol=1e-5, rtol=1e-5), (out2n, ref2n)

    # Case 3: bf16 logits, C=128 (exercises the MXU lane-reduction offload),
    # multi-tile grid with a bf16-native row tile.
    B3, C3 = 24, 128
    x3 = jax.random.normal(k3x, (B3, C3), dtype=jnp.float32).astype(jnp.bfloat16)
    t3 = jax.random.randint(k3t, (B3,), 0, C3, dtype=jnp.int32)
    out3 = jax.block_until_ready(lsr_loss(x3, t3, e=0.1, block_rows=16))
    ref3 = _lsr_ref(x3.astype(jnp.float32), t3, e=0.1)
    assert jnp.allclose(out3, ref3, atol=1e-5, rtol=1e-5), (out3, ref3)

    print("KERNEL_OK")
</pallas_src>

<mosaic_0001>
module attributes {stable_mosaic.version = 11 : i64} {
  func.func @_lsr_kernel(%arg0: i32, %arg1: memref<8x32xf32, #tpu.memory_space<vmem>>, %arg2: memref<8x1xi32, #tpu.memory_space<vmem>>, %arg3: memref<1x1x1xf32, #tpu.memory_space<vmem>>) attributes {dimension_semantics = [#tpu.dimension_semantics<parallel>], iteration_bounds = array<i64: 1>, scalar_prefetch = 0 : i64, scratch_operands = 0 : i64, tpu.core_type = #tpu.core_type<tc>, window_params = [{transform_indices = @transform_0, window_bounds = array<i64: 8, 32>}, {transform_indices = @transform_1, window_bounds = array<i64: 8, 1>}, {transform_indices = @transform_2, window_bounds = array<i64: 1, 1, 1>}]} {
    %c0 = arith.constant 0 : index
    %c0_0 = arith.constant 0 : index
    %0 = vector.load %arg1[%c0, %c0_0] : memref<8x32xf32, #tpu.memory_space<vmem>>, vector<8x32xf32>
    %c0_1 = arith.constant 0 : index
    %c0_2 = arith.constant 0 : index
    %1 = vector.load %arg2[%c0_1, %c0_2] : memref<8x1xi32, #tpu.memory_space<vmem>>, vector<8x1xi32>
    %cst = arith.constant dense<0xFF800000> : vector<8xf32>
    %2 = vector.multi_reduction <maximumf>, %0, %cst [1] : vector<8x32xf32> to vector<8xf32>
    %3 = vector.shape_cast %2 : vector<8xf32> to vector<8x1xf32>
    %4 = vector.broadcast %3 : vector<8x1xf32> to vector<8x32xf32>
    %5 = arith.subf %0, %4 : vector<8x32xf32>
    %6 = tpu.iota {dimensions = array<i32: 1>} : vector<1x32xi32>
    %7 = vector.broadcast %6 : vector<1x32xi32> to vector<8x32xi32>
    %8 = vector.broadcast %1 : vector<8x1xi32> to vector<8x32xi32>
    %9 = arith.cmpi eq, %7, %8 : vector<8x32xi32>
    %cst_3 = arith.constant 0.000000e+00 : f32
    %10 = vector.broadcast %cst_3 : f32 to vector<8x32xf32>
    %11 = arith.select %9, %5, %10 : vector<8x32xi1>, vector<8x32xf32>
    %cst_4 = arith.constant dense<0.000000e+00> : vector<8xf32>
    %12 = vector.multi_reduction <add>, %11, %cst_4 [1] : vector<8x32xf32> to vector<8xf32>
    %13 = vector.shape_cast %12 : vector<8xf32> to vector<8x1xf32>
    %14 = math.exp %5 : vector<8x32xf32>
    %cst_5 = arith.constant dense<0.000000e+00> : vector<8xf32>
    %15 = vector.multi_reduction <add>, %14, %cst_5 [1] : vector<8x32xf32> to vector<8xf32>
    %16 = vector.shape_cast %15 : vector<8xf32> to vector<8x1xf32>
    %cst_6 = arith.constant dense<0.000000e+00> : vector<8xf32>
    %17 = vector.multi_reduction <add>, %5, %cst_6 [1] : vector<8x32xf32> to vector<8xf32>
    %18 = vector.shape_cast %17 : vector<8xf32> to vector<8x1xf32>
    %19 = math.log %16 : vector<8x1xf32>
    %cst_7 = arith.constant 0.899999976 : f32
    %20 = vector.broadcast %cst_7 : f32 to vector<8x1xf32>
    %21 = arith.mulf %20, %13 : vector<8x1xf32>
    %22 = arith.subf %19, %21 : vector<8x1xf32>
    %cst_8 = arith.constant 3.125000e-03 : f32
    %23 = vector.broadcast %cst_8 : f32 to vector<8x1xf32>
    %24 = arith.mulf %23, %18 : vector<8x1xf32>
    %25 = arith.subf %22, %24 : vector<8x1xf32>
    %26 = tpu.iota {dimensions = array<i32: 0>} : vector<8x1xi32>
    %c8_i32 = arith.constant 8 : i32
    %27 = arith.muli %arg0, %c8_i32 : i32
    %28 = vector.broadcast %27 : i32 to vector<8x1xi32>
    %29 = arith.addi %26, %28 : vector<8x1xi32>
    %c2_i32 = arith.constant 2 : i32
    %30 = vector.broadcast %c2_i32 : i32 to vector<8x1xi32>
    %31 = arith.cmpi slt, %29, %30 : vector<8x1xi32>
    %cst_9 = arith.constant 0.000000e+00 : f32
    %32 = vector.broadcast %cst_9 : f32 to vector<8x1xf32>
    %33 = arith.select %31, %25, %32 : vector<8x1xi1>, vector<8x1xf32>
    %cst_10 = arith.constant dense<0.000000e+00> : vector<1xf32>
    %34 = vector.multi_reduction <add>, %33, %cst_10 [0] : vector<8x1xf32> to vector<1xf32>
    %35 = vector.shape_cast %34 : vector<1xf32> to vector<1x1xf32>
    %36 = vector.shape_cast %35 : vector<1x1xf32> to vector<1x1x1xf32>
    %c0_11 = arith.constant 0 : index
    %c0_12 = arith.constant 0 : index
    %c0_13 = arith.constant 0 : index
    %37 = vector.load %arg3[%c0_11, %c0_12, %c0_13] : memref<1x1x1xf32, #tpu.memory_space<vmem>>, vector<1x1x1xf32>
    tpu.vector_store %arg3[%c0_11, %c0_12, %c0_13], %36 {strides = array<i32>} : memref<1x1x1xf32, #tpu.memory_space<vmem>>, vector<1x1x1xf32>,
    return
  }
  func.func @transform_0(%arg0: i32) -> (i32, i32) {
    %c0_i32 = arith.constant 0 : i32
    %c0_i32_0 = arith.constant 0 : i32
    return %arg0, %c0_i32 : i32, i32
  }
  func.func @transform_1(%arg0: i32) -> (i32, i32) {
    %c0_i32 = arith.constant 0 : i32
    %c0_i32_0 = arith.constant 0 : i32
    return %arg0, %c0_i32 : i32, i32
  }
  func.func @transform_2(%arg0: i32) -> (i32, i32, i32) {
    %c0_i32 = arith.constant 0 : i32
    %c0_i32_0 = arith.constant 0 : i32
    %c0_i32_1 = arith.constant 0 : i32
    return %arg0, %c0_i32, %c0_i32_0 : i32, i32, i32
  }
}

</mosaic_0001>

<bundles_post_ra>
// kernel: tpu_custom_call.1
= control target key start
LH: loop header
LB: loop body
LE: loop exit
PB: predicated region body
PF: predicated region fallthrough
CT: control target
= control target key end

     0   :  { %vm14_vm0 = vcmask 261120   ;;  %s142_s0 = inlined_call_operand.vmem [shape: f32[2,32], index: 0, kind: input, shape index: {}]   ;;  %s143_s1 = inlined_call_operand.vmem [shape: s32[2,1], index: 1, kind: input, shape index: {}]   ;;  %s144_s2 = inlined_call_operand.hbm [shape: f32[1,1,1], index: 2, kind: output, shape index: {}]  }
   0x1   :  { %v12_v0 = vld [vmem:[%s142_s0] sm:$0xff] }
   0x2   :  { %7 = vsyncpa [#allocation3], 0  ;;  %v15_v1 = vsel %vm14_vm0, %v12_v0, -inf  ;;  %v103_v2 = vmov 0   ;;  %v13_v3 = vld [vmem:[%s143_s1] sm:$0xff]  ;;  %v19_v7 = vlaneseq  ;;  %s104_s0 = smov [#allocation2]  }
   0x3   :  { %74 = vset.pattern.permute.xlu0 %v103_v2  ;;  %s64_s1 = sshll.u32 %s104_s0, 4  ;;  %vm56_vm3 = vcmask 0   ;;  %s65_s1 = int_to_ptr.vmem [resolvable:$true] %s64_s1 }
   0x4   :  { %16 = vmax.xlane.f32.xlu0 %v15_v1  ;;  %v20_v8 = vand.u32 127, %v19_v7  ;;  %v44_v18 = vshrl.u32 %v19_v7, 7  ;;  %s79_s13 = scalar_lea.vmem %s65_s1, 16  ;;  %s83_s14 = scalar_lea.vmem %s65_s1, 32 }
   0x5   :  { %p80_p0 = scmp.ne.s32.totalorder %s65_s1, %s79_s13  ;;  %p84_p1 = scmp.lt.s32.totalorder %s65_s1, %s65_s1 }
   0x6   :  { %vm48_vm2 = vcmp.lt.s32.totalorder %v44_v18, 2  ;;  %p85_p2 = scmp.lt.s32.totalorder %s83_s14, %s79_s13 }
   0x8   :  { %p86_p3 = por %p85_p2, %p84_p1 }
   0xa   :  { %p87_p4 = pnand %p86_p3, %p80_p0 }
  0x1a   :  { %22 = vperm.xlu0 %74, %v13_v3  }
  0x91   :  { %v17_v4 = vpop.xlane.xlu0 %16 }
  0x92   :  { %v18_v5 = vsub.f32 %v12_v0, %v17_v4 }
  0x94   :  { %v29_v6 = vmul.f32 1.442695, %v18_v5  ;;  %v34_v14 = vsel %vm14_vm0, %v18_v5, 0.0 }
  0x96   :  { %75 = vpow2.f32 %v29_v6 }
  0x99   :  { %v23_v9 = vpop.permute.xlu0 %22 }
  0x9a   :  { %vm24_vm1 = vcmp.eq.s32.totalorder %v20_v8, %v23_v9 }
  0x9b   :  { %v25_v12 = vsel %vm24_vm1, %v18_v5, 0.0 }
  0x9c   :  { %v26_v13 = vsel %vm14_vm0, %v25_v12, 0.0 }
  0xa0   :  { %v76_v10 = vpop.eup %75 }
  0xa1   :  { %v31_v11 = vsel %vm14_vm0, %v76_v10, 0.0 }
  0xa2   :  { %32 = vadd.xlane.f32.xlu1 %v31_v11 }
  0xa6   :  { %27 = vadd.xlane.f32.xlu1 %v26_v13 }
  0xaa   :  { %35 = vadd.xlane.f32.xlu1 %v34_v14 }
 0x12f   :  { %v33_v15 = vpop.xlane.xlu1 %32 }
 0x130   :  { %77 = vlog2.f32 %v33_v15 }
 0x133   :  { %v28_v16 = vpop.xlane.xlu1 %27 }
 0x134   :  { %v39_v21 = vmul.f32 0.9, %v28_v16 }
 0x137   :  { %v36_v19 = vpop.xlane.xlu1 %35 }
 0x138   :  { %v41_v23 = vmul.f32 0.003125, %v36_v19 }
 0x13a   :  { %v78_v17 = vpop.eup %77 }
 0x13b   :  { %v38_v20 = vmul.f32 0.6931472, %v78_v17 }
 0x13d   :  { %v40_v22 = vsub.f32 %v38_v20, %v39_v21 }
 0x13f   :  { %v42_v24 = vsub.f32 %v40_v22, %v41_v23 }
 0x141   :  { %v49_v25 = vsel %vm48_vm2, %v42_v24, 0.0 }
 0x142   :  { %v50_v26 = vrot.slane %v49_v25, 4 }
 0x144   :  { %v51_v27 = vadd.f32 %v50_v26, %v49_v25 }
 0x146   :  { %v52_v28 = vrot.slane %v51_v27, 2 }
 0x148   :  { %v53_v29 = vadd.f32 %v52_v28, %v51_v27 }
 0x14a   :  { %v54_v30 = vrot.slane %v53_v29, 1 }
 0x14c   :  { %v55_v31 = vadd.f32 %v54_v30, %v53_v29 }
 0x14e   :  { %57 = vst.msk [vmem:[#allocation2] sm:$0x1] %vm56_vm3, %v55_v31 }
 0x14f   :  { %90 = shalt.err (!%p87_p4)
}
 0x150   :  { %s91_s17 = scalar_lea.hbm %s144_s2, 16 }
 0x151   :  { %p92_p5 = scmp.ne.s32.totalorder %s144_s2, %s91_s17  ;;  %p95_p6 = scmp.lt.u32.totalorder %s91_s17, %s144_s2 }
 0x153   :  { %p97_p7 = pnand %p95_p6, %p92_p5 }
 0x155   :  { %100 = shalt.err (!%p97_p7)
}
 0x156   :  { %67 = dma.vmem_to_hbm [thread:$0]  %s65_s1, 16, %s144_s2, [#allocation3]  }
 0x157   :  { %101 = dma.done.wait [#allocation3], 16  }
 0x158   :  { %102 = vsyncadd [#allocation3], 4294967280 }
 0x159   :  { %71 = vsyncpa [#allocation3], 1 }

</bundles_post_ra>
